<compile_context>
chip_gen: v5e
topology: v5e:2x2
jax: 0.10.0
libtpu: 0.0.40
codegen_flags: <defaults>
</compile_context>

<pallas_src>
import functools

import jax
import jax.numpy as jnp
from jax.experimental import pallas as pl
from jax.experimental.pallas import tpu as pltpu

INPUT_SHAPE = 784
HIDDEN1 = 128
HIDDEN2 = 64
PADDED_HIDDEN2 = 128   # lane-dense hidden2 (zero-padded; exact)
NUM_CLASSES = 10
PADDED_CLASSES = 128   # lane-dense output slab (>= NUM_CLASSES, multiple of 128)


def _round_up(n, m):
    return ((n + m - 1) // m) * m


def _mlp_kernel(x_ref, w1_ref, b1_ref, w2_ref, b2_ref, w3_ref, b3_ref, o_ref):
    # In-kernel x cast: f32 tile streamed from HBM, bf16 operand for the MXU.
    x_bf = x_ref[...].astype(jnp.bfloat16)
    # fc1 + ReLU  (bf16 operands, f32 MXU accumulation)
    h1 = jnp.dot(x_bf, w1_ref[...], preferred_element_type=jnp.float32)
    h1 = jnp.maximum(h1 + b1_ref[...], 0.0).astype(jnp.bfloat16)
    # fc2 + ReLU (hidden2 zero-padded 64->128; relu(0+0)=0 keeps it exact)
    h2 = jnp.dot(h1, w2_ref[...], preferred_element_type=jnp.float32)
    h2 = jnp.maximum(h2 + b2_ref[...], 0.0).astype(jnp.bfloat16)
    # fc3 (logits) -- class dim padded to 128 lanes; padded columns carry a
    # -1e30 bias so they contribute exp() == 0 to the softmax.
    logits = jnp.dot(h2, w3_ref[...], preferred_element_type=jnp.float32)
    logits = logits + b3_ref[...]
    # softmax over the class (last) axis == PyTorch dim=1 for a 2-D input
    m = jnp.max(logits, axis=-1, keepdims=True)
    e = jnp.exp(logits - m)
    denom = jnp.sum(e, axis=-1, keepdims=True)
    o_ref[...] = (e / denom).astype(o_ref.dtype)   # exact divide; bf16 store


def prepare_params(params):
    """One-time param prep (call outside the hot path).

    Casts weights to bf16, pads hidden2 64->128 (zeros; exact) and the class
    dim 10->128 (zero weight columns, -1e30 bias so softmax ignores them).
    """
    w1 = params["w1"].astype(jnp.bfloat16)                       # (784, 128)
    b1 = params["b1"].reshape(1, HIDDEN1).astype(jnp.float32)    # (1, 128)

    w2 = jnp.zeros((HIDDEN1, PADDED_HIDDEN2), jnp.bfloat16)
    w2 = w2.at[:, :HIDDEN2].set(params["w2"].astype(jnp.bfloat16))
    b2 = jnp.zeros((1, PADDED_HIDDEN2), jnp.float32)
    b2 = b2.at[:, :HIDDEN2].set(params["b2"].reshape(1, HIDDEN2).astype(jnp.float32))

    w3 = jnp.zeros((PADDED_HIDDEN2, PADDED_CLASSES), jnp.bfloat16)
    w3 = w3.at[:HIDDEN2, :NUM_CLASSES].set(params["w3"].astype(jnp.bfloat16))
    b3 = jnp.full((1, PADDED_CLASSES), -1e30, jnp.float32)
    b3 = b3.at[:, :NUM_CLASSES].set(params["b3"].reshape(1, NUM_CLASSES).astype(jnp.float32))

    return {"w1": w1, "b1": b1, "w2": w2, "b2": b2, "w3": w3, "b3": b3}


@functools.partial(jax.jit, static_argnames=("tb", "return_padded"))
def custom_nn_forward(x, prepared, *, tb=1024, return_padded=False):
    """x: (B, 784) float32. prepared: output of prepare_params().

    Returns (B, 10) f32 softmax probabilities, or the raw lane-dense
    (b_pad, 128) bf16 slab when return_padded=True (padded classes are 0).
    """
    B = x.shape[0]

    # Batch tile: multiple of 8 sublanes; clamp so the grid has >= 2 steps when
    # B permits (both v7x TensorCores engage via the "parallel" axis).
    half = _round_up((B + 1) // 2, 8)
    tb_eff = max(8, min(tb, half))
    b_pad = _round_up(B, tb_eff)
    if b_pad != B:
        # Only copies x when B is not a tile multiple; pass such B to avoid it.
        x = jnp.pad(x, ((0, b_pad - B), (0, 0)))

    grid = (b_pad // tb_eff,)

    out = pl.pallas_call(
        _mlp_kernel,
        out_shape=jax.ShapeDtypeStruct((b_pad, PADDED_CLASSES), jnp.bfloat16),
        grid=grid,
        in_specs=[
            # x: f32, tiled along the batch axis (pipelined / double-buffered).
            pl.BlockSpec((tb_eff, INPUT_SHAPE), lambda i: (i, 0)),
            # weights / biases: constant index_map -> DMA'd once, VMEM-resident.
            pl.BlockSpec(prepared["w1"].shape, lambda i: (0, 0)),
            pl.BlockSpec(prepared["b1"].shape, lambda i: (0, 0)),
            pl.BlockSpec(prepared["w2"].shape, lambda i: (0, 0)),
            pl.BlockSpec(prepared["b2"].shape, lambda i: (0, 0)),
            pl.BlockSpec(prepared["w3"].shape, lambda i: (0, 0)),
            pl.BlockSpec(prepared["b3"].shape, lambda i: (0, 0)),
        ],
        out_specs=pl.BlockSpec((tb_eff, PADDED_CLASSES), lambda i: (i, 0)),
        compiler_params=pltpu.CompilerParams(
            dimension_semantics=("parallel",),  # v7x: shard batch tiles across 2 TCs
        ),
    )(x, prepared["w1"], prepared["b1"], prepared["w2"], prepared["b2"],
      prepared["w3"], prepared["b3"])

    if return_padded:
        return out
    return out[:B, :NUM_CLASSES].astype(jnp.float32)


def init_params(key):
    """Deterministic Kaiming-uniform-ish init matching nn.Linear shapes (W as (in,out))."""
    ks = jax.random.split(key, 6)

    def linear(kw, kb, fan_in, fan_out):
        bound = 1.0 / jnp.sqrt(fan_in)
        w = jax.random.uniform(kw, (fan_in, fan_out), jnp.float32, -bound, bound)
        b = jax.random.uniform(kb, (1, fan_out), jnp.float32, -bound, bound)
        return w, b

    w1, b1 = linear(ks[0], ks[1], INPUT_SHAPE, HIDDEN1)
    w2, b2 = linear(ks[2], ks[3], HIDDEN1, HIDDEN2)
    w3, b3 = linear(ks[4], ks[5], HIDDEN2, NUM_CLASSES)
    return {"w1": w1, "b1": b1, "w2": w2, "b2": b2, "w3": w3, "b3": b3}


def _reference(x, p):
    """Pure-JAX reference mirroring the kernel's bf16 operand / f32 accumulate path.

    NOTE: weights are bf16 in the kernel, so results will not match a PyTorch
    f32 CustomNN bit-for-bit; this reference mirrors the bf16 path.
    """
    w1 = p["w1"].astype(jnp.bfloat16)
    w2 = p["w2"].astype(jnp.bfloat16)
    w3 = p["w3"].astype(jnp.bfloat16)
    h1 = jnp.dot(x.astype(jnp.bfloat16), w1, preferred_element_type=jnp.float32) + p["b1"]
    h1 = jnp.maximum(h1, 0.0).astype(jnp.bfloat16)
    h2 = jnp.dot(h1, w2, preferred_element_type=jnp.float32) + p["b2"]
    h2 = jnp.maximum(h2, 0.0).astype(jnp.bfloat16)
    logits = jnp.dot(h2, w3, preferred_element_type=jnp.float32) + p["b3"]
    return jax.nn.softmax(logits, axis=1)


if __name__ == "__main__":
    key = jax.random.PRNGKey(0)
    k_x, k_p = jax.random.split(key)

    B = 64  # small batch; tile clamps to 32 -> grid=(2,) exercises the pipelined grid
    x = jax.random.normal(k_x, (B, INPUT_SHAPE), jnp.float32)
    params = init_params(k_p)
    prepared = prepare_params(params)  # one-time prep, outside the forward path

    out = custom_nn_forward(x, prepared)
    out = jax.block_until_ready(out)

    ref = _reference(x, params)
    assert out.shape == (B, NUM_CLASSES)
    # bf16 operands + bf16 output quantization -> relaxed tolerance vs. reference
    assert jnp.allclose(out, ref, atol=6e-3, rtol=3e-2), float(jnp.max(jnp.abs(out - ref)))
    # rows of a softmax must sum to ~1 (bf16 output gives a few-1e-3 slack)
    assert jnp.allclose(jnp.sum(out, axis=1), jnp.ones((B,)), atol=1e-2)

    print("KERNEL_OK")
</pallas_src>

<mosaic_0001>
module attributes {stable_mosaic.version = 11 : i64} {
  func.func @_mlp_kernel(%arg0: i32, %arg1: memref<32x784xf32, #tpu.memory_space<vmem>>, %arg2: memref<784x128xbf16, #tpu.memory_space<vmem>>, %arg3: memref<1x128xf32, #tpu.memory_space<vmem>>, %arg4: memref<128x128xbf16, #tpu.memory_space<vmem>>, %arg5: memref<1x128xf32, #tpu.memory_space<vmem>>, %arg6: memref<128x128xbf16, #tpu.memory_space<vmem>>, %arg7: memref<1x128xf32, #tpu.memory_space<vmem>>, %arg8: memref<32x128xbf16, #tpu.memory_space<vmem>>) attributes {dimension_semantics = [#tpu.dimension_semantics<parallel>], iteration_bounds = array<i64: 2>, scalar_prefetch = 0 : i64, scratch_operands = 0 : i64, tpu.core_type = #tpu.core_type<tc>, window_params = [{transform_indices = @transform_0, window_bounds = array<i64: 32, 784>}, {pipeline_mode = #tpu.pipeline_mode<synchronous>, transform_indices = @transform_1, window_bounds = array<i64: 784, 128>}, {pipeline_mode = #tpu.pipeline_mode<synchronous>, transform_indices = @transform_2, window_bounds = array<i64: 1, 128>}, {pipeline_mode = #tpu.pipeline_mode<synchronous>, transform_indices = @transform_3, window_bounds = array<i64: 128, 128>}, {pipeline_mode = #tpu.pipeline_mode<synchronous>, transform_indices = @transform_4, window_bounds = array<i64: 1, 128>}, {pipeline_mode = #tpu.pipeline_mode<synchronous>, transform_indices = @transform_5, window_bounds = array<i64: 128, 128>}, {pipeline_mode = #tpu.pipeline_mode<synchronous>, transform_indices = @transform_6, window_bounds = array<i64: 1, 128>}, {transform_indices = @transform_7, window_bounds = array<i64: 32, 128>}]} {
    %c0 = arith.constant 0 : index
    %c0_0 = arith.constant 0 : index
    %0 = vector.load %arg1[%c0, %c0_0] : memref<32x784xf32, #tpu.memory_space<vmem>>, vector<32x784xf32>
    %1 = arith.truncf %0 : vector<32x784xf32> to vector<32x784xbf16>
    %c0_1 = arith.constant 0 : index
    %c0_2 = arith.constant 0 : index
    %2 = vector.load %arg2[%c0_1, %c0_2] : memref<784x128xbf16, #tpu.memory_space<vmem>>, vector<784x128xbf16>
    %cst = arith.constant dense<0.000000e+00> : vector<32x128xf32>
    %3 = tpu.matmul %1, %2, %cst {dimension_numbers = #tpu.dot_dimension_numbers<[1], [0], [0], [1], [0, 0, 1, 1], [], []>} : vector<32x784xbf16>, vector<784x128xbf16>, vector<32x128xf32> -> vector<32x128xf32>
    %c0_3 = arith.constant 0 : index
    %c0_4 = arith.constant 0 : index
    %4 = vector.load %arg3[%c0_3, %c0_4] : memref<1x128xf32, #tpu.memory_space<vmem>>, vector<1x128xf32>
    %5 = vector.broadcast %4 : vector<1x128xf32> to vector<32x128xf32>
    %6 = arith.addf %3, %5 : vector<32x128xf32>
    %cst_5 = arith.constant 0.000000e+00 : f32
    %7 = vector.broadcast %cst_5 : f32 to vector<32x128xf32>
    %8 = arith.maximumf %6, %7 : vector<32x128xf32>
    %9 = arith.truncf %8 : vector<32x128xf32> to vector<32x128xbf16>
    %c0_6 = arith.constant 0 : index
    %c0_7 = arith.constant 0 : index
    %10 = vector.load %arg4[%c0_6, %c0_7] : memref<128x128xbf16, #tpu.memory_space<vmem>>, vector<128x128xbf16>
    %cst_8 = arith.constant dense<0.000000e+00> : vector<32x128xf32>
    %11 = tpu.matmul %9, %10, %cst_8 {dimension_numbers = #tpu.dot_dimension_numbers<[1], [0], [0], [1], [0, 0, 1, 1], [], []>} : vector<32x128xbf16>, vector<128x128xbf16>, vector<32x128xf32> -> vector<32x128xf32>
    %c0_9 = arith.constant 0 : index
    %c0_10 = arith.constant 0 : index
    %12 = vector.load %arg5[%c0_9, %c0_10] : memref<1x128xf32, #tpu.memory_space<vmem>>, vector<1x128xf32>
    %13 = vector.broadcast %12 : vector<1x128xf32> to vector<32x128xf32>
    %14 = arith.addf %11, %13 : vector<32x128xf32>
    %cst_11 = arith.constant 0.000000e+00 : f32
    %15 = vector.broadcast %cst_11 : f32 to vector<32x128xf32>
    %16 = arith.maximumf %14, %15 : vector<32x128xf32>
    %17 = arith.truncf %16 : vector<32x128xf32> to vector<32x128xbf16>
    %c0_12 = arith.constant 0 : index
    %c0_13 = arith.constant 0 : index
    %18 = vector.load %arg6[%c0_12, %c0_13] : memref<128x128xbf16, #tpu.memory_space<vmem>>, vector<128x128xbf16>
    %cst_14 = arith.constant dense<0.000000e+00> : vector<32x128xf32>
    %19 = tpu.matmul %17, %18, %cst_14 {dimension_numbers = #tpu.dot_dimension_numbers<[1], [0], [0], [1], [0, 0, 1, 1], [], []>} : vector<32x128xbf16>, vector<128x128xbf16>, vector<32x128xf32> -> vector<32x128xf32>
    %c0_15 = arith.constant 0 : index
    %c0_16 = arith.constant 0 : index
    %20 = vector.load %arg7[%c0_15, %c0_16] : memref<1x128xf32, #tpu.memory_space<vmem>>, vector<1x128xf32>
    %21 = vector.broadcast %20 : vector<1x128xf32> to vector<32x128xf32>
    %22 = arith.addf %19, %21 : vector<32x128xf32>
    %cst_17 = arith.constant dense<0xFF800000> : vector<32xf32>
    %23 = vector.multi_reduction <maximumf>, %22, %cst_17 [1] : vector<32x128xf32> to vector<32xf32>
    %24 = vector.shape_cast %23 : vector<32xf32> to vector<32x1xf32>
    %25 = vector.broadcast %24 : vector<32x1xf32> to vector<32x128xf32>
    %26 = arith.subf %22, %25 : vector<32x128xf32>
    %27 = math.exp %26 : vector<32x128xf32>
    %cst_18 = arith.constant dense<0.000000e+00> : vector<32xf32>
    %28 = vector.multi_reduction <add>, %27, %cst_18 [1] : vector<32x128xf32> to vector<32xf32>
    %29 = vector.shape_cast %28 : vector<32xf32> to vector<32x1xf32>
    %30 = vector.broadcast %29 : vector<32x1xf32> to vector<32x128xf32>
    %31 = arith.divf %27, %30 : vector<32x128xf32>
    %32 = arith.truncf %31 : vector<32x128xf32> to vector<32x128xbf16>
    %c0_19 = arith.constant 0 : index
    %c0_20 = arith.constant 0 : index
    %33 = vector.load %arg8[%c0_19, %c0_20] : memref<32x128xbf16, #tpu.memory_space<vmem>>, vector<32x128xbf16>
    tpu.vector_store %arg8[%c0_19, %c0_20], %32 {strides = array<i32>} : memref<32x128xbf16, #tpu.memory_space<vmem>>, vector<32x128xbf16>,
    return
  }
  func.func @transform_0(%arg0: i32) -> (i32, i32) {
    %c0_i32 = arith.constant 0 : i32
    %c0_i32_0 = arith.constant 0 : i32
    return %arg0, %c0_i32 : i32, i32
  }
  func.func @transform_1(%arg0: i32) -> (i32, i32) {
    %c0_i32 = arith.constant 0 : i32
    %c0_i32_0 = arith.constant 0 : i32
    %c0_i32_1 = arith.constant 0 : i32
    return %c0_i32, %c0_i32_0 : i32, i32
  }
  func.func @transform_2(%arg0: i32) -> (i32, i32) {
    %c0_i32 = arith.constant 0 : i32
    %c0_i32_0 = arith.constant 0 : i32
    %c0_i32_1 = arith.constant 0 : i32
    return %c0_i32, %c0_i32_0 : i32, i32
  }
  func.func @transform_3(%arg0: i32) -> (i32, i32) {
    %c0_i32 = arith.constant 0 : i32
    %c0_i32_0 = arith.constant 0 : i32
    %c0_i32_1 = arith.constant 0 : i32
    return %c0_i32, %c0_i32_0 : i32, i32
  }
  func.func @transform_4(%arg0: i32) -> (i32, i32) {
    %c0_i32 = arith.constant 0 : i32
    %c0_i32_0 = arith.constant 0 : i32
    %c0_i32_1 = arith.constant 0 : i32
    return %c0_i32, %c0_i32_0 : i32, i32
  }
  func.func @transform_5(%arg0: i32) -> (i32, i32) {
    %c0_i32 = arith.constant 0 : i32
    %c0_i32_0 = arith.constant 0 : i32
    %c0_i32_1 = arith.constant 0 : i32
    return %c0_i32, %c0_i32_0 : i32, i32
  }
  func.func @transform_6(%arg0: i32) -> (i32, i32) {
    %c0_i32 = arith.constant 0 : i32
    %c0_i32_0 = arith.constant 0 : i32
    %c0_i32_1 = arith.constant 0 : i32
    return %c0_i32, %c0_i32_0 : i32, i32
  }
  func.func @transform_7(%arg0: i32) -> (i32, i32) {
    %c0_i32 = arith.constant 0 : i32
    %c0_i32_0 = arith.constant 0 : i32
    return %arg0, %c0_i32 : i32, i32
  }
}

</mosaic_0001>

<bundles_post_ra>
// kernel: custom_nn_forward.1
= control target key start
LH: loop header
LB: loop body
LE: loop exit
PB: predicated region body
PF: predicated region fallthrough
CT: control target
= control target key end

     0   :  { %12 = vsyncpa [#allocation3], 0  ;;  %s2227_s0 = inlined_call_operand.hbm [shape: f32[64,784], index: 0, kind: input, shape index: {}]   ;;  %s2228_s1 = inlined_call_operand.hbm [shape: bf16[784,128], index: 1, kind: input, shape index: {}]   ;;  %s2229_s2 = inlined_call_operand.hbm [shape: f32[1,128], index: 2, kind: input, shape index: {}]   ;;  %s2230_s3 = inlined_call_operand.hbm [shape: bf16[128,128], index: 3, kind: input, shape index: {}]   ;;  %s2231_s4 = inlined_call_operand.vmem [shape: f32[1,128], index: 4, kind: input, shape index: {}]   ;;  %s2232_s5 = inlined_call_operand.hbm [shape: bf16[128,128], index: 5, kind: input, shape index: {}]   ;;  %s2233_s6 = inlined_call_operand.vmem [shape: f32[1,128], index: 6, kind: input, shape index: {}]   ;;  %s2234_s7 = inlined_call_operand.vmem [shape: bf16[64,128], index: 7, kind: output, shape index: {}]  }
   0x1   :  { %14 = vsyncpa [#allocation3 + $0x1], 0 }
   0x2   :  { %15 = vsyncpa [#allocation5], 0 }
   0x3   :  { %16 = vsyncpa [#allocation8], 0  ;;  %s2048_s24 = smov 0   ;;  %s2050_s25 = smov 0  }
   0x4   :  { %s2052_s26 = smov 0   ;;  %s2054_s27 = smov 0  }
   0x5 LB: > { %s2235_s28 = sadd.s32 4294967295, %s1998_s27   ;;  %p42_p0 = scmp.ne.s32.totalorder %s1990_s25, %s1986_s24  ;;  %s1998_s27 = sphi %s2054_s27, %s2245_s27   ;;  %s1994_s26 = sphi %s2052_s26, %s2244_s26   ;;  %s1990_s25 = sphi %s2050_s25, %s2243_s25   ;;  %s1986_s24 = sphi %s2048_s24, %s2242_s24  }
   0x6   : > { %p2070_p1 = scmp.eq.s32.totalorder %s2235_s28, 0  ;;  %p1336_p2 = scmp.ge.s32.totalorder %s1998_s27, 1 }
   0x7   : > { %p205_p3 = scmp.lt.s32.totalorder %s1998_s27, 3  ;;  %s216_s10 = sshll.u32 %s2228_s1, 4  ;;  %s217_s10 = int_to_ptr.hbm [resolvable:$true] %s216_s10 }
   0x8   : > { %p2078_p4 = por %p2070_p1, %p42_p0  ;;  %s2000_s12 = smov [#allocation4]  }
   0x9   : > { %p2085_p5 = pnand %p1336_p2, %p205_p3  ;;  %s218_s13 = sshll.u32 %s2000_s12, 4  ;;  %s219_s13 = int_to_ptr.vmem [resolvable:$true] %s218_s13 }
   0xa   : > { %s242_s17 = sshll.u32 %s2230_s3, 4  ;;  %s2001_s18 = smov 64   ;;  %s243_s17 = int_to_ptr.hbm [resolvable:$true] %s242_s17 }
   0xb   : > { %p1721_p6 = pneg %p2085_p5  ;;  %s2002_s19 = smov 4  }
   0xc   : > { %s2003_s20 = smov [#allocation7]   ;;  %s231_s24 = sshll.u32 %s2229_s2, 4  ;;  %s232_s24 = int_to_ptr.hbm [resolvable:$true] %s231_s24 }
   0xd   : > { %p2093_p7 = pnand %p1721_p6, %p2070_p1  ;;  %s244_s21 = sshll.u32 %s2003_s20, 4  ;;  %s245_s21 = int_to_ptr.vmem [resolvable:$true] %s244_s21 }
   0xe   : > { %s2004_s12 = smov [#allocation6]   ;;  %s2005_s15 = smov [#allocation9]  }
   0xf   : > { %1724 = dma.hbm_to_vmem [thread:$0]  (!%p2093_p7), %s217_s10, 6272, %s219_s13, [#allocation5], %s2001_s18, %s2001_s18, %s2002_s19  }
  0x10   : > { %1730 = dma.hbm_to_vmem [thread:$0]  (!%p2093_p7), %s243_s17, 1024, %s245_s21, [#allocation8], %s2001_s18, %s2001_s18, %s2002_s19  }
  0x11   : > { %s259_s10 = sshll.u32 %s2232_s5, 4  ;;  %s233_s13 = sshll.u32 %s2004_s12, 4  ;;  %s260_s10 = int_to_ptr.hbm [resolvable:$true] %s259_s10  ;;  %s234_s13 = int_to_ptr.vmem [resolvable:$true] %s233_s13 }
  0x12   : > { %1727 = dma.hbm_to_vmem [thread:$0]  (!%p2093_p7), %s232_s24, 16, %s234_s13, [#allocation5]  }
  0x13   : > { %s261_s16 = sshll.u32 %s2005_s15, 4  ;;  %s2115_s17 = sadd.s32 1, %s1998_s27   ;;  %s262_s16 = int_to_ptr.vmem [resolvable:$true] %s261_s16 }
  0x14   : > { %1733 = dma.hbm_to_vmem [thread:$0]  (!%p2093_p7), %s260_s10, 1024, %s262_s16, [#allocation8], %s2001_s18, %s2001_s18, %s2002_s19  }
  0x15   : > { %s29_s20 = sadd.s32 1, %s1994_s26  ;;  %s26_s21 = ssub.s32 %s1998_s27, %s2115_s17 }
  0x16   : > { %p36_p8 = scmp.ne.s32.totalorder %s1994_s26, %s1990_s25  ;;  %p27_p9 = scmp.eq.s32.totalorder %s26_s21, 0 }
  0x17   : > { %p37_p10 = scmp.eq.s32.totalorder %s1998_s27, 0  ;;  %p1742_p11 = scmp.lt.s32.totalorder %s1998_s27, 2 }
  0x18   : > { %s278_s22 = sand.u32 1, %s1994_s26   ;;  %s1701_s8 = smul.u32 224, %s1998_s27 }
  0x19   : > { %s2126_s23 = scalar_select %p27_p9, %s1994_s26, %s29_s20  }
  0x1a   : > { %p38_p12 = por %p37_p10, %p36_p8  ;;  %s1700_s24 = smul.u32 224, %s278_s22 }
  0x1b   : > { %s288_s19 = scalar_lea.hbm %s2227_s0, %s1701_s8  ;;  %s279_s15 = scalar_lea.sflag [#allocation3], %s278_s22 }
  0x1c   : > { %p2129_p13 = pnand %p1742_p11, %p38_p12  ;;  %s282_s10 = scalar_lea.vmem [#allocation2], %s1700_s24 }
  0x1d   : > { %s291_s12 = sshll.u32 %s282_s10, 4  ;;  %s289_s13 = sshll.u32 %s288_s19, 4  ;;  %s292_s12 = int_to_ptr.vmem [resolvable:$true] %s291_s12  ;;  %s290_s13 = int_to_ptr.hbm [resolvable:$true] %s289_s13 }
  0x1e   : > { %s1926_s16 = sshra.s32 %s290_s13, 4  ;;  %p1930_p2 = pneg %p2129_p13  ;;  %s1927_s16 = int_to_ptr.hbm [resolvable:$true] %s1926_s16 }
  0x1f   : > { %s1928_s20 = scalar_lea.hbm %s1927_s16, 224  ;;  %s1933_s14 = scalar_lea.hbm %s2227_s0, 448 }
  0x20   : > { %p1929_p0 = scmp.ne.s32.totalorder %s1927_s16, %s1928_s20  ;;  %p1934_p7 = scmp.lt.s32.totalorder %s1927_s16, %s2227_s0 }
  0x21   : > { %p1935_p8 = scmp.lt.s32.totalorder %s1933_s14, %s1928_s20 }
  0x22   : > { %p1931_p3 = pnand %p1930_p2, %p1929_p0 }
  0x23   : > { %p1936_p9 = por %p1935_p8, %p1934_p7 }
  0x24   : > { %p1932_p6 = pneg %p1931_p3 }
  0x26   : > { %p1937_p10 = pnand %p1936_p9, %p1932_p6 }
  0x28   : > { %1940 = shalt.err (!%p1937_p10)
}
  0x29   : > { %s2006_s22 = smov 896   ;;  %s2007_s24 = smov 56  }
  0x2a   : > { %1737 = dma.hbm_to_vmem [thread:$0]  (!%p2129_p13), %s290_s13, 3584, %s292_s12, %s279_s15, %s2006_s22, %s2006_s22, %s2007_s24  }
  0x2b   : > { %303 = sbr.rel (%p2085_p5) target bundleno = 828 (0x33c), region = 48  ;;  %s305_s28 = sand.u32 (!%p2085_p5), 1, %s1990_s25  }
  0x2c   : > { %s1702_s19 = smul.u32 (!%p2085_p5), 224, %s305_s28  ;;  %s306_s10 = scalar_lea.sflag (!%p2085_p5), [#allocation3], %s305_s28 }
  0x2e   : > { %s2149_s21 = scalar_lea.vmem (!%p2085_p5), [#allocation2], %s1702_s19 }
  0x30   : > { %1973 = dma.done.wait (%p2078_p4), %s306_s10, 3584  }
  0x31   : > { %1975 = vsyncadd (%p2078_p4), %s306_s10, 4294963712 }
  0x32   : > { %1977 = dma.done.wait (%p2070_p1), [#allocation5], 6288  }
  0x33   : > { %1979 = vsyncadd (%p2070_p1), [#allocation5], 4294961008 }
  0x34   : > { %1981 = dma.done.wait (%p2070_p1), [#allocation8], 2048  }
  0x35   : > { %1983 = vsyncadd (%p2070_p1), [#allocation8], 4294965248  ;;  %v1623_v0 = vld [vmem:[#allocation4 + $0x38] sm:$0xff]  ;;  %v1622_v4 = vld [vmem:[#allocation4 + $0x30] sm:$0xff]  ;;  %vm807_vm0 = vcmask 130048   ;;  %s2241_s12 = sadd.s32 4294967295, %s1998_s27  }
  0x36   : > { %v1631_v1 = vld [vmem:[#allocation4 + $0x78] sm:$0xff]  ;;  %814 = vmatpush.bf16.msra.mxu0 %v1623_v0  ;;  %v1630_v5 = vld [vmem:[#allocation4 + $0x70] sm:$0xff]  ;;  %v1621_v8 = vld [vmem:[#allocation4 + $0x28] sm:$0xff]  ;;  %s1350_s13 = sshll.u32 %s2241_s12, 2 }
  0x37   : > { %v1639_v2 = vld [vmem:[#allocation4 + $0xb8] sm:$0xff]  ;;  %833 = vmatpush.bf16.msra.mxu1 %v1631_v1  ;;  %v1638_v6 = vld [vmem:[#allocation4 + $0xb0] sm:$0xff]  ;;  %v1629_v9 = vld [vmem:[#allocation4 + $0x68] sm:$0xff]  ;;  %p363_p1 = scmp.lt.s32.totalorder %s1350_s13, 7 }
  0x38   : > { %v1647_v3 = vld [vmem:[#allocation4 + $0xf8] sm:$0xff]  ;;  %852 = vmatpush.bf16.msra.mxu2 %v1639_v2  ;;  %v1646_v7 = vld [vmem:[#allocation4 + $0xf0] sm:$0xff]  ;;  %v1637_v10 = vld [vmem:[#allocation4 + $0xa8] sm:$0xff] }
  0x39   : > { %871 = vmatpush.bf16.msra.mxu3 %v1647_v3  ;;  %v1645_v11 = vld [vmem:[#allocation4 + $0xe8] sm:$0xff]  ;;  %v1620_v12 = vld [vmem:[#allocation4 + $0x20] sm:$0xff]  ;;  %v1619_v16 = vld [vmem:[#allocation4 + $0x18] sm:$0xff]  ;;  %s2247_s13 = smov (!%p363_p1, %s1350_s13), 7 }
  0x3a   : > { %815 = vmatpush.bf16.msra.mxu0 %v1622_v4  ;;  %v1628_v13 = vld [vmem:[#allocation4 + $0x60] sm:$0xff]  ;;  %v1627_v17 = vld [vmem:[#allocation4 + $0x58] sm:$0xff]  ;;  %v1618_v20 = vld [vmem:[#allocation4 + $0x10] sm:$0xff]  ;;  %s1351_s27 = sshll.u32 %s2247_s13, 2 }
  0x3b   : > { %834 = vmatpush.bf16.msra.mxu1 %v1630_v5  ;;  %v1636_v14 = vld [vmem:[#allocation4 + $0xa0] sm:$0xff]  ;;  %v1635_v18 = vld [vmem:[#allocation4 + $0x98] sm:$0xff]  ;;  %v1626_v21 = vld [vmem:[#allocation4 + $0x50] sm:$0xff]  ;;  %s2208_s20 = scalar_lea.vmem %s2234_s7, %s1351_s27 }
  0x3c   : > { %853 = vmatpush.bf16.msra.mxu2 %v1638_v6  ;;  %v1644_v15 = vld [vmem:[#allocation4 + $0xe0] sm:$0xff]  ;;  %v1643_v19 = vld [vmem:[#allocation4 + $0xd8] sm:$0xff]  ;;  %v1634_v22 = vld [vmem:[#allocation4 + $0x90] sm:$0xff] }
  0x3d   : > { %872 = vmatpush.bf16.msra.mxu3 %v1646_v7  ;;  %v1642_v23 = vld [vmem:[#allocation4 + $0xd0] sm:$0xff]  ;;  %v1617_v24 = vld [vmem:[#allocation4 + $0x8] sm:$0xff]  ;;  %v1616_v28 = vld [vmem:[#allocation4] sm:$0xff] }
  0x3e   : > { %816 = vmatpush.bf16.msra.mxu0 %v1621_v8  ;;  %v1625_v25 = vld [vmem:[#allocation4 + $0x48] sm:$0xff]  ;;  %v1624_v29 = vld [vmem:[#allocation4 + $0x40] sm:$0xff]  ;;  %v376_v33 = vld [vmem:[%s2149_s21 + $0x38] sm:$0xff] }
  0x3f   : > { %835 = vmatpush.bf16.msra.mxu1 %v1629_v9  ;;  %v1633_v26 = vld [vmem:[#allocation4 + $0x88] sm:$0xff]  ;;  %v1632_v30 = vld [vmem:[#allocation4 + $0x80] sm:$0xff]  ;;  %v371_v36 = vld [vmem:[%s2149_s21 + $0x10] sm:$0xff] }
  0x40   : > { %854 = vmatpush.bf16.msra.mxu2 %v1637_v10  ;;  %v1641_v27 = vld [vmem:[#allocation4 + $0xc8] sm:$0xff]  ;;  %v1640_v31 = vld [vmem:[#allocation4 + $0xc0] sm:$0xff]  ;;  %v1655_v39 = vld [vmem:[#allocation4 + $0x138] sm:$0xff] }
  0x41   : > { %873 = vmatpush.bf16.msra.mxu3 %v1645_v11  ;;  %v369_v32 = vld [vmem:[%s2149_s21] sm:$0xff]  ;;  %v370_v34 = vld [vmem:[%s2149_s21 + $0x8] sm:$0xff]  ;;  %v372_v40 = vld [vmem:[%s2149_s21 + $0x18] sm:$0xff] }
  0x42   : > { %817 = vmatpush.bf16.msra.mxu0 %v1620_v12  ;;  %v377_v35 = vld [vmem:[%s2149_s21 + $0x40] sm:$0xff]  ;;  %v378_v37 = vld [vmem:[%s2149_s21 + $0x48] sm:$0xff]  ;;  %v379_v41 = vld [vmem:[%s2149_s21 + $0x50] sm:$0xff]  ;;  %v397_v42 = vpack.c.bf16 %v376_v33, %v369_v32 }
  0x43   : > { %836 = vmatpush.bf16.msra.mxu1 %v1628_v13  ;;  %v1664_v38 = vld [vmem:[#allocation4 + $0x180] sm:$0xff]  ;;  %v398_v43 = vpack.c.bf16 %v377_v35, %v370_v34  ;;  %v399_v44 = vpack.c.bf16 %v378_v37, %v371_v36  ;;  %v1663_v45 = vld [vmem:[#allocation4 + $0x178] sm:$0xff]  ;;  %v400_v46 = vpack.c.bf16 %v379_v41, %v372_v40  ;;  %v1654_v47 = vld [vmem:[#allocation4 + $0x130] sm:$0xff] }
  0x44   : > { %855 = vmatpush.bf16.msra.mxu2 %v1636_v14  ;;  %v1662_v48 = vld [vmem:[#allocation4 + $0x170] sm:$0xff]  ;;  %v1653_v49 = vld [vmem:[#allocation4 + $0x128] sm:$0xff]  ;;  %v1652_v51 = vld [vmem:[#allocation4 + $0x120] sm:$0xff] }
  0x45   : > { %874 = vmatpush.bf16.msra.mxu3 %v1644_v15  ;;  %v1661_v50 = vld [vmem:[#allocation4 + $0x168] sm:$0xff]  ;;  %v1660_v52 = vld [vmem:[#allocation4 + $0x160] sm:$0xff]  ;;  %v383_v53 = vld [vmem:[%s2149_s21 + $0x70] sm:$0xff] }
  0x46   : > { %818 = vmatpush.bf16.msra.mxu0 %v1619_v16  ;;  %v390_v54 = vld [vmem:[%s2149_s21 + $0xa8] sm:$0xff]  ;;  %v384_v55 = vld [vmem:[%s2149_s21 + $0x78] sm:$0xff]  ;;  %v391_v56 = vld [vmem:[%s2149_s21 + $0xb0] sm:$0xff] }
  0x47   : > { %837 = vmatpush.bf16.msra.mxu1 %v1627_v17  ;;  %v385_v57 = vld [vmem:[%s2149_s21 + $0x80] sm:$0xff]  ;;  %v392_v58 = vld [vmem:[%s2149_s21 + $0xb8] sm:$0xff]  ;;  %v386_v60 = vld [vmem:[%s2149_s21 + $0x88] sm:$0xff]  ;;  %v404_v62 = vpack.c.bf16 %v390_v54, %v383_v53  ;;  %v405_v63 = vpack.c.bf16 %v391_v56, %v384_v55 }
  0x48   : > { %856 = vmatpush.bf16.msra.mxu2 %v1635_v18  ;;  %v1651_v59 = vld [vmem:[#allocation4 + $0x118] sm:$0xff]  ;;  %v393_v61 = vld [vmem:[%s2149_s21 + $0xc0] sm:$0xff]  ;;  %v406_v0 = vpack.c.bf16 %v392_v58, %v385_v57  ;;  %v1650_v3 = vld [vmem:[#allocation4 + $0x110] sm:$0xff] }
  0x49   : > { %875 = vmatpush.bf16.msra.mxu3 %v1643_v19  ;;  %v1659_v1 = vld [vmem:[#allocation4 + $0x158] sm:$0xff]  ;;  %v407_v2 = vpack.c.bf16 %v393_v61, %v386_v60  ;;  %v1658_v4 = vld [vmem:[#allocation4 + $0x150] sm:$0xff]  ;;  %v1649_v5 = vld [vmem:[#allocation4 + $0x108] sm:$0xff] }
  0x4a   : > { %819 = vmatpush.bf16.msra.mxu0 %v1618_v20  ;;  %v1657_v6 = vld [vmem:[#allocation4 + $0x148] sm:$0xff]  ;;  %v1648_v7 = vld [vmem:[#allocation4 + $0x100] sm:$0xff]  ;;  %v380_v10 = vld [vmem:[%s2149_s21 + $0x58] sm:$0xff] }
  0x4b   : > { %838 = vmatpush.bf16.msra.mxu1 %v1626_v21  ;;  %v1656_v8 = vld [vmem:[#allocation4 + $0x140] sm:$0xff]  ;;  %v374_v11 = vld [vmem:[%s2149_s21 + $0x28] sm:$0xff]  ;;  %v375_v13 = vld [vmem:[%s2149_s21 + $0x30] sm:$0xff] }
  0x4c   : > { %857 = vmatpush.bf16.msra.mxu2 %v1634_v22  ;;  %v373_v9 = vld [vmem:[%s2149_s21 + $0x20] sm:$0xff]  ;;  %v382_v14 = vld [vmem:[%s2149_s21 + $0x68] sm:$0xff]  ;;  %v387_v18 = vld [vmem:[%s2149_s21 + $0x90] sm:$0xff] }
  0x4d   : > { %876 = vmatpush.bf16.msra.mxu3 %v1642_v23  ;;  %v381_v12 = vld [vmem:[%s2149_s21 + $0x60] sm:$0xff]  ;;  %v401_v15 = vpack.c.bf16 %v380_v10, %v373_v9  ;;  %v403_v17 = vpack.c.bf16 %v382_v14, %v375_v13  ;;  %v394_v19 = vld [vmem:[%s2149_s21 + $0xc8] sm:$0xff]  ;;  %v388_v20 = vld [vmem:[%s2149_s21 + $0x98] sm:$0xff] }
  0x4e   : > { %820 = vmatpush.bf16.msra.mxu0 %v1617_v24  ;;  %v402_v16 = vpack.c.bf16 %v381_v12, %v374_v11  ;;  %v395_v21 = vld [vmem:[%s2149_s21 + $0xd0] sm:$0xff]  ;;  %v389_v22 = vld [vmem:[%s2149_s21 + $0xa0] sm:$0xff]  ;;  %v396_v23 = vld [vmem:[%s2149_s21 + $0xd8] sm:$0xff]  ;;  %v408_v24 = vpack.c.bf16 %v394_v19, %v387_v18 }
  0x4f   : > { %839 = vmatpush.bf16.msra.mxu1 %v1625_v25  ;;  %v409_v25 = vpack.c.bf16 %v395_v21, %v388_v20  ;;  %v1669_v32 = vld [vmem:[#allocation7 + $0x20] sm:$0xff]  ;;  %v1668_v33 = vld [vmem:[#allocation7 + $0x18] sm:$0xff]  ;;  %v1667_v37 = vld [vmem:[#allocation7 + $0x10] sm:$0xff] }
  0x50   : > { %858 = vmatpush.bf16.msra.mxu2 %v1633_v26  ;;  %v410_v26 = vpack.c.bf16 %v396_v23, %v389_v22  ;;  %v1677_v14 = vld [vmem:[#allocation9 + $0x20] sm:$0xff] }
  0x51   : > { %877 = vmatpush.bf16.msra.mxu3 %v1641_v27  ;;  %v1672_v27 = vld [vmem:[#allocation7 + $0x38] sm:$0xff] }
  0x52   : > { %821 = vmatpush.bf16.msra.mxu0 %v1616_v28  ;;  %v1671_v28 = vld [vmem:[#allocation7 + $0x30] sm:$0xff] }
  0x53   : > { %840 = vmatpush.bf16.msra.mxu1 %v1624_v29  ;;  %v1670_v29 = vld [vmem:[#allocation7 + $0x28] sm:$0xff] }
  0x54   : > { %859 = vmatpush.bf16.msra.mxu2 %v1632_v30 }
  0x55   : > { %878 = vmatpush.bf16.msra.mxu3 %v1640_v31  ;;  %822 = vmatmul.bf16.vlgmr.msra.gmra.mxu0 %v397_v42  ;;  %v1665_v42 = vld [vmem:[#allocation7] sm:$0xff] }
  0x56   : > { %890 = vmatpush.bf16.msrb.mxu0 %v1655_v39  ;;  %841 = vmatmul.bf16.vlgmr.msra.gmra.mxu1 %v398_v43  ;;  %v1787_v43 = vld [vmem:[#allocation6] ss:$0 sm:$0xff] }
  0x57   : > { %860 = vmatmul.bf16.vlgmr.msra.gmra.mxu2 %v399_v44  ;;  %909 = vmatpush.bf16.msrb.mxu1 %v1663_v45 }
  0x58   : > { %935 = vmatpush.bf16.msrb.mxu2 %v1664_v38  ;;  %879 = vmatmul.bf16.vlgmr.msra.gmra.mxu3 %v400_v46  ;;  %v1666_v38 = vld [vmem:[#allocation7 + $0x8] sm:$0xff] }
  0x59   : > { %1021 = vmatpush.bf16.msrb.mxu3 %v1672_v27 }
  0x5a   : > { %891 = vmatpush.bf16.msrb.mxu0 %v1654_v47 }
  0x5b   : > { %910 = vmatpush.bf16.msrb.mxu1 %v1662_v48 }
  0x5d   : > { %1022 = vmatpush.bf16.msrb.mxu3 %v1671_v28 }
  0x5e   : > { %892 = vmatpush.bf16.msrb.mxu0 %v1653_v49 }
  0x5f   : > { %911 = vmatpush.bf16.msrb.mxu1 %v1661_v50 }
  0x61   : > { %1023 = vmatpush.bf16.msrb.mxu3 %v1670_v29 }
  0x62   : > { %893 = vmatpush.bf16.msrb.mxu0 %v1652_v51 }
  0x63   : > { %912 = vmatpush.bf16.msrb.mxu1 %v1660_v52 }
  0x65   : > { %827 = vmatmul.bf16.gmra.mxu0 %v404_v62  ;;  %1024 = vmatpush.bf16.msrb.mxu3 %v1669_v32 }
  0x66   : > { %894 = vmatpush.bf16.msrb.mxu0 %v1651_v59  ;;  %846 = vmatmul.bf16.gmra.mxu1 %v405_v63  ;;  %v1680_v59 = vld [vmem:[#allocation9 + $0x38] sm:$0xff] }
  0x67   : > { %865 = vmatmul.bf16.gmra.mxu2 %v406_v0  ;;  %913 = vmatpush.bf16.msrb.mxu1 %v1659_v1  ;;  %v1679_v0 = vld [vmem:[#allocation9 + $0x30] sm:$0xff] }
  0x68   : > { %884 = vmatmul.bf16.gmra.mxu3 %v407_v2 }
  0x69   : > { %1025 = vmatpush.bf16.msrb.mxu3 %v1668_v33 }
  0x6a   : > { %895 = vmatpush.bf16.msrb.mxu0 %v1650_v3 }
  0x6b   : > { %914 = vmatpush.bf16.msrb.mxu1 %v1658_v4 }
  0x6d   : > { %1026 = vmatpush.bf16.msrb.mxu3 %v1667_v37 }
  0x6e   : > { %896 = vmatpush.bf16.msrb.mxu0 %v1649_v5 }
  0x6f   : > { %915 = vmatpush.bf16.msrb.mxu1 %v1657_v6  ;;  %v1678_v6 = vld [vmem:[#allocation9 + $0x28] sm:$0xff] }
  0x71   : > { %1027 = vmatpush.bf16.msrb.mxu3 %v1666_v38  ;;  %v1676_v38 = vld [vmem:[#allocation9 + $0x18] sm:$0xff] }
  0x72   : > { %897 = vmatpush.bf16.msrb.mxu0 %v1648_v7 }
  0x73   : > { %916 = vmatpush.bf16.msrb.mxu1 %v1656_v8 }
  0x75   : > { %898 = vmatmul.bf16.vlgmr.msrb.gmra.mxu0 %v401_v15  ;;  %1028 = vmatpush.bf16.msrb.mxu3 %v1665_v42 }
  0x76   : > { %917 = vmatmul.bf16.vlgmr.msrb.gmra.mxu1 %v402_v16  ;;  %1114 = vmatpush.bf16.msra.mxu0 %v1680_v59 }
  0x77   : > { %1548 = vmatmul.msk.bf16.vlgmr.msrb.gmra.mxu2 %vm807_vm0, %v403_v17  ;;  %1692 = vmatpush.bf16.msra.mxu1 %v1680_v59 }
  0x7a   : > { %1115 = vmatpush.bf16.msra.mxu0 %v1679_v0 }
  0x7b   : > { %1693 = vmatpush.bf16.msra.mxu1 %v1679_v0 }
  0x7e   : > { %1116 = vmatpush.bf16.msra.mxu0 %v1678_v6 }
  0x7f   : > { %1694 = vmatpush.bf16.msra.mxu1 %v1678_v6 }
  0x82   : > { %1117 = vmatpush.bf16.msra.mxu0 %v1677_v14 }
  0x83   : > { %1695 = vmatpush.bf16.msra.mxu1 %v1677_v14 }
  0x85   : > { %903 = vmatmul.bf16.gmra.mxu0 %v408_v24 }
  0x86   : > { %922 = vmatmul.bf16.gmra.mxu1 %v409_v25  ;;  %1118 = vmatpush.bf16.msra.mxu0 %v1676_v38 }
  0x87   : > { %1549 = vmatmul.msk.bf16.gmra.mxu2 %vm807_vm0, %v410_v26  ;;  %1696 = vmatpush.bf16.msra.mxu1 %v1676_v38 }
  0xd2   : > { %v823_v30 = vpop.f32.mrf.mxu0 }
  0xd3   : > { %v842_v31 = vpop.f32.mrf.mxu1  ;;  %v824_v48 = vadd.f32 %v1787_v43, %v823_v30 }
  0xd5   : > { %v843_v49 = vadd.f32 %v842_v31, %v824_v48 }
  0xda   : > { %v861_v34 = vpop.f32.mrf.mxu2  ;;  %v825_v35 = vpop.f32.mrf.mxu0 }
  0xdb   : > { %v844_v36 = vpop.f32.mrf.mxu1  ;;  %v880_v44 = vpop.f32.mrf.mxu3  ;;  %v826_v50 = vadd.f32 %v1787_v43, %v825_v35  ;;  %v862_v55 = vadd.f32 %v861_v34, %v843_v49 }
  0xdd   : > { %v845_v56 = vadd.f32 %v844_v36, %v826_v50  ;;  %v881_v58 = vadd.f32 %v880_v44, %v862_v55 }
  0xe2   : > { %v863_v39 = vpop.f32.mrf.mxu2  ;;  %v828_v40 = vpop.f32.mrf.mxu0 }
  0xe3   : > { %v847_v41 = vpop.f32.mrf.mxu1  ;;  %v882_v54 = vpop.f32.mrf.mxu3  ;;  %v864_v57 = vadd.f32 %v863_v39, %v845_v56  ;;  %v829_v2 = vadd.f32 %v1787_v43, %v828_v40  ;;  %v1675_v39 = vld [vmem:[#allocation9 + $0x10] sm:$0xff]  ;;  %v1674_v40 = vld [vmem:[#allocation9 + $0x8] sm:$0xff] }
  0xe4   : > { %1119 = vmatpush.bf16.msra.mxu0 %v1675_v39  ;;  %1697 = vmatpush.bf16.msra.mxu1 %v1675_v39 }
  0xe5   : > { %v883_v61 = vadd.f32 %v882_v54, %v864_v57  ;;  %v848_v7 = vadd.f32 %v847_v41, %v829_v2  ;;  %v1673_v41 = vld [vmem:[#allocation9] sm:$0xff]  ;;  %v1789_v57 = vld [vmem:[%s2233_s6] ss:$0 sm:$0xff] }
  0xe8   : > { %1120 = vmatpush.bf16.msra.mxu0 %v1674_v40  ;;  %1698 = vmatpush.bf16.msra.mxu1 %v1674_v40 }
  0xea   : > { %v866_v45 = vpop.f32.mrf.mxu2  ;;  %v830_v46 = vpop.f32.mrf.mxu0 }
  0xeb   : > { %v849_v47 = vpop.f32.mrf.mxu1  ;;  %v885_v4 = vpop.f32.mrf.mxu3  ;;  %v831_v8 = vadd.f32 %v1787_v43, %v830_v46  ;;  %v867_v15 = vadd.f32 %v866_v45, %v848_v7  ;;  %v1788_v43 = vld [vmem:[%s2231_s4] ss:$0 sm:$0xff] }
  0xec   : > { %1121 = vmatpush.bf16.msra.mxu0 %v1673_v41  ;;  %1699 = vmatpush.bf16.msra.mxu1 %v1673_v41 }
  0xed   : > { %v850_v16 = vadd.f32 %v849_v47, %v831_v8  ;;  %v886_v23 = vadd.f32 %v885_v4, %v867_v15 }
  0xf2   : > { %v868_v51 = vpop.f32.mrf.mxu2  ;;  %v899_v52 = vpop.f32.mrf.mxu0 }
  0xf3   : > { %v918_v53 = vpop.f32.mrf.mxu1  ;;  %v900_v62 = vadd.f32 %v899_v52, %v881_v58  ;;  %v869_v20 = vadd.f32 %v868_v51, %v850_v16  ;;  %v887_v22 = vpop.f32.mrf.mxu3 }
  0xf5   : > { %v919_v5 = vadd.f32 %v918_v53, %v900_v62  ;;  %v888_v25 = vadd.f32 %v887_v22, %v869_v20 }
  0xfa   : > { %v937_v60 = vpop.f32.mrf.mxu2  ;;  %v901_v63 = vpop.f32.mrf.mxu0 }
  0xfb   : > { %v920_v1 = vpop.f32.mrf.mxu1  ;;  %v902_v3 = vadd.f32 %v901_v63, %v883_v61  ;;  %v938_v9 = vadd.f32 %v937_v60, %v919_v5 }
  0xfd   : > { %v921_v10 = vadd.f32 %v920_v1, %v902_v3  ;;  %v947_v17 = vmax.f32 %v938_v9, 0.0 }
 0x102   : > { %v939_v11 = vpop.f32.mrf.mxu2  ;;  %v904_v13 = vpop.f32.mrf.mxu0 }
 0x103   : > { %v940_v12 = vadd.f32 %v939_v11, %v921_v10  ;;  %v923_v19 = vpop.f32.mrf.mxu1  ;;  %v905_v26 = vadd.f32 %v904_v13, %v886_v23 }
 0x105   : > { %v948_v18 = vmax.f32 %v940_v12, 0.0  ;;  %v924_v29 = vadd.f32 %v923_v19, %v905_v26 }
 0x107   : > { %v951_v21 = vpack.c.bf16 %v948_v18, %v947_v17 }
 0x109   : > { %1029 = vmatmul.bf16.vlgmr.msrb.gmra.mxu3 %v951_v21 }
 0x10a   : > { %v942_v24 = vpop.f32.mrf.mxu2  ;;  %v906_v27 = vpop.f32.mrf.mxu0 }
 0x10b   : > { %v907_v28 = vadd.f32 %v906_v27, %v888_v25  ;;  %v925_v30 = vpop.f32.mrf.mxu1  ;;  %v943_v31 = vadd.f32 %v942_v24, %v924_v29 }
 0x10d   : > { %v926_v32 = vadd.f32 %v925_v30, %v907_v28  ;;  %v949_v35 = vmax.f32 %v943_v31, 0.0 }
 0x112   : > { %v944_v33 = vpop.f32.mrf.mxu2 }
 0x113   : > { %v945_v34 = vadd.f32 %v944_v33, %v926_v32 }
 0x115   : > { %v950_v36 = vmax.f32 %v945_v34, 0.0 }
 0x117   : > { %v952_v37 = vpack.c.bf16 %v950_v36, %v949_v35 }
 0x119   : > { %1034 = vmatmul.bf16.gmra.mxu3 %v952_v37 }
 0x18c   : > { %v1030_v42 = vpop.f32.mrf.mxu3 }
 0x18d   : > { %v1031_v44 = vadd.f32 %v1788_v43, %v1030_v42 }
 0x18f   : > { %v1040_v47 = vmax.f32 %v1031_v44, 0.0 }
 0x194   : > { %v1032_v45 = vpop.f32.mrf.mxu3 }
 0x195   : > { %v1033_v46 = vadd.f32 %v1788_v43, %v1032_v45 }
 0x197   : > { %v1041_v48 = vmax.f32 %v1033_v46, 0.0 }
 0x199   : > { %v1044_v49 = vpack.c.bf16 %v1041_v48, %v1040_v47 }
 0x19b   : > { %1122 = vmatmul.bf16.vlgmr.msra.gmra.mxu0 %v1044_v49 }
 0x19c   : > { %v1035_v50 = vpop.f32.mrf.mxu3 }
 0x19d   : > { %v1036_v51 = vadd.f32 %v1788_v43, %v1035_v50 }
 0x19f   : > { %v1042_v54 = vmax.f32 %v1036_v51, 0.0 }
 0x1a4   : > { %v1037_v52 = vpop.f32.mrf.mxu3 }
 0x1a5   : > { %v1038_v53 = vadd.f32 %v1788_v43, %v1037_v52 }
 0x1a7   : > { %v1043_v55 = vmax.f32 %v1038_v53, 0.0 }
 0x1a9   : > { %v1045_v56 = vpack.c.bf16 %v1043_v55, %v1042_v54 }
 0x1ab   : > { %1127 = vmatmul.bf16.vlgmr.msra.gmra.mxu1 %v1045_v56 }
 0x218   : > { %v1123_v58 = vpop.f32.mrf.mxu0 }
 0x219   : > { %v1124_v59 = vadd.f32 %v1789_v57, %v1123_v58 }
 0x21b   : > { %1133 = vmax.xlane.f32.xlu0 %v1124_v59 }
 0x220   : > { %v1125_v60 = vpop.f32.mrf.mxu0 }
 0x221   : > { %v1126_v61 = vadd.f32 %v1789_v57, %v1125_v60 }
 0x223   : > { %1135 = vmax.xlane.f32.xlu0 %v1126_v61 }
 0x228   : > { %v1128_v62 = vpop.f32.mrf.mxu1 }
 0x229   : > { %v1129_v63 = vadd.f32 %v1789_v57, %v1128_v62 }
 0x22b   : > { %1137 = vmax.xlane.f32.xlu1 %v1129_v63 }
 0x230   : > { %v1130_v0 = vpop.f32.mrf.mxu1 }
 0x231   : > { %v1131_v1 = vadd.f32 %v1789_v57, %v1130_v0 }
 0x233   : > { %1139 = vmax.xlane.f32.xlu1 %v1131_v1 }
 0x28e   : > { %v1134_v2 = vpop.xlane.xlu0 %1133 }
 0x28f   : > { %v1141_v3 = vsub.f32 %v1124_v59, %v1134_v2 }
 0x291   : > { %v1145_v4 = vmul.f32 1.442695, %v1141_v3 }
 0x293   : > { %1790 = vpow2.f32 %v1145_v4 }
 0x296   : > { %v1136_v5 = vpop.xlane.xlu0 %1135 }
 0x297   : > { %v1142_v6 = vsub.f32 %v1126_v61, %v1136_v5 }
 0x299   : > { %v1791_v7 = vpop.eup %1790  ;;  %v1147_v8 = vmul.f32 1.442695, %v1142_v6 }
 0x29a   : > { %1153 = vadd.xlane.f32.xlu2 %v1791_v7 }
 0x29b   : > { %1792 = vpow2.f32 %v1147_v8 }
 0x29e   : > { %v1138_v9 = vpop.xlane.xlu1 %1137 }
 0x29f   : > { %v1143_v10 = vsub.f32 %v1129_v63, %v1138_v9 }
 0x2a1   : > { %v1793_v11 = vpop.eup %1792  ;;  %v1149_v12 = vmul.f32 1.442695, %v1143_v10 }
 0x2a2   : > { %1155 = vadd.xlane.f32.xlu2 %v1793_v11 }
 0x2a3   : > { %1794 = vpow2.f32 %v1149_v12 }
 0x2a6   : > { %v1140_v13 = vpop.xlane.xlu1 %1139 }
 0x2a7   : > { %v1144_v14 = vsub.f32 %v1131_v1, %v1140_v13 }
 0x2a9   : > { %v2197_v15 = vpop.eup %1794  ;;  %v1151_v16 = vmul.f32 1.442695, %v1144_v14 }
 0x2aa   : > { %1157 = vadd.xlane.f32.xlu0 %v2197_v15 }
 0x2ab   : > { %1796 = vpow2.f32 %v1151_v16 }
 0x2b1   : > { %v2200_v17 = vpop.eup %1796 }
 0x2b2   : > { %1159 = vadd.xlane.f32.xlu1 %v2200_v17 }
 0x30d   : > { %v1154_v18 = vpop.xlane.xlu2 %1153 }
 0x30e   : > { %1798 = vrcp.f32 %v1154_v18  ;;  %v1172_v28 = vand.u32 2147483648, %v1154_v18  ;;  %vm1166_vm2 = vweird.f32 %v1154_v18  ;;  %v1170_v29 = vand.u32 2147483647, %v1154_v18 }
 0x310   : > { %v1173_v35 = vor.u32 1.1754944e-38, %v1172_v28  ;;  %vm1171_vm5 = vcmp.eq.f32.partialorder %v1170_v29, 8.507059e+37 }
 0x314   : > { %v1799_v19 = vpop.eup %1798 }
 0x315   : > { %v1162_v20 = vmul.f32 %v1799_v19, %v1154_v18  ;;  %v1156_v21 = vpop.xlane.xlu2 %1155  ;;  %vm1167_vm1 = vweird.f32 %v1799_v19 }
 0x316   : > { %1800 = vrcp.f32 %v1156_v21  ;;  %vm1168_vm3 = vmor %vm1166_vm2, %vm1167_vm1  ;;  %v1187_v31 = vand.u32 2147483648, %v1156_v21  ;;  %v1185_v34 = vand.u32 2147483647, %v1156_v21  ;;  %vm1181_vm6 = vweird.f32 %v1156_v21 }
 0x317   : > { %v1163_v22 = vsub.f32 1.0, %v1162_v20 }
 0x318   : > { %v1188_v39 = vor.u32 1.1754944e-38, %v1187_v31  ;;  %vm1186_vm8 = vcmp.eq.f32.partialorder %v1185_v34, 8.507059e+37 }
 0x319   : > { %v1164_v23 = vmul.f32 %v1799_v19, %v1163_v22 }
 0x31b   : > { %v1165_v25 = vadd.f32 %v1799_v19, %v1164_v23 }
 0x31c   : > { %v1801_v24 = vpop.eup %1800 }
 0x31d   : > { %v1177_v26 = vmul.f32 %v1801_v24, %v1156_v21  ;;  %v1158_v27 = vpop.xlane.xlu0 %1157  ;;  %v1169_v32 = vsel %vm1168_vm3, %v1799_v19, %v1165_v25  ;;  %vm1182_vm4 = vweird.f32 %v1801_v24 }
 0x31e   : > { %1802 = vrcp.f32 %v1158_v27  ;;  %v1174_v38 = vsel %vm1171_vm5, %v1173_v35, %v1169_v32  ;;  %vm1183_vm7 = vmor %vm1181_vm6, %vm1182_vm4  ;;  %v1202_v52 = vand.u32 2147483648, %v1158_v27  ;;  %vm1196_vm10 = vweird.f32 %v1158_v27 }
 0x31f   : > { %v1178_v30 = vsub.f32 1.0, %v1177_v26  ;;  %v1175_v44 = vmul.f32 %v1791_v7, %v1174_v38  ;;  %v1200_v53 = vand.u32 2147483647, %v1158_v27 }
 0x320   : > { %v1203_v59 = vor.u32 1.1754944e-38, %v1202_v52 }
 0x321   : > { %v1179_v33 = vmul.f32 %v1801_v24, %v1178_v30  ;;  %vm1201_vm13 = vcmp.eq.f32.partialorder %v1200_v53, 8.507059e+37 }
 0x323   : > { %v1180_v36 = vadd.f32 %v1801_v24, %v1179_v33 }
 0x324   : > { %v1803_v37 = vpop.eup %1802 }
 0x325   : > { %v1184_v40 = vsel %vm1183_vm7, %v1801_v24, %v1180_v36  ;;  %v1192_v41 = vmul.f32 %v1803_v37, %v1158_v27  ;;  %v1160_v42 = vpop.xlane.xlu1 %1159  ;;  %vm1197_vm9 = vweird.f32 %v1803_v37 }
 0x326   : > { %v1189_v43 = vsel %vm1186_vm8, %v1188_v39, %v1184_v40  ;;  %1804 = vrcp.f32 %v1160_v42  ;;  %vm1198_vm11 = vmor %vm1196_vm10, %vm1197_vm9  ;;  %v1217_v55 = vand.u32 2147483648, %v1160_v42  ;;  %v1215_v58 = vand.u32 2147483647, %v1160_v42 }
 0x327   : > { %v1190_v45 = vmul.f32 %v1793_v11, %v1189_v43  ;;  %v1193_v46 = vsub.f32 1.0, %v1192_v41  ;;  %vm1211_vm14 = vweird.f32 %v1160_v42 }
 0x328   : > { %v1218_v62 = vor.u32 1.1754944e-38, %v1217_v55  ;;  %vm1216_vm0 = vcmp.eq.f32.partialorder %v1215_v58, 8.507059e+37 }
 0x329   : > { %v1684_v47 = vpack.c.bf16 %v1190_v45, %v1175_v44  ;;  %v1194_v48 = vmul.f32 %v1803_v37, %v1193_v46 }
 0x32b   : > { %1685 = vst [vmem:[%s2208_s20] sm:$0xff] %v1684_v47   ;;  %v1195_v50 = vadd.f32 %v1803_v37, %v1194_v48 }
 0x32c   : > { %v1805_v49 = vpop.eup %1804 }
 0x32d   : > { %v1207_v51 = vmul.f32 %v1805_v49, %v1160_v42  ;;  %v1199_v56 = vsel %vm1198_vm11, %v1803_v37, %v1195_v50  ;;  %vm1212_vm12 = vweird.f32 %v1805_v49 }
 0x32e   : > { %v1204_v61 = vsel %vm1201_vm13, %v1203_v59, %v1199_v56  ;;  %vm1213_vm15 = vmor %vm1211_vm14, %vm1212_vm12 }
 0x32f   : > { %v1208_v54 = vsub.f32 1.0, %v1207_v51  ;;  %v1205_v1 = vmul.f32 %v2197_v15, %v1204_v61 }
 0x331   : > { %v1209_v57 = vmul.f32 %v1805_v49, %v1208_v54 }
 0x333   : > { %v1210_v60 = vadd.f32 %v1805_v49, %v1209_v57 }
 0x335   : > { %v1214_v63 = vsel %vm1213_vm15, %v1805_v49, %v1210_v60 }
 0x336   : > { %v1219_v0 = vsel %vm1216_vm0, %v1218_v62, %v1214_v63 }
 0x337   : > { %v1220_v2 = vmul.f32 %v2200_v17, %v1219_v0 }
 0x339   : > { %v1689_v3 = vpack.c.bf16 %v1220_v2, %v1205_v1 }
 0x33b   : > { %1691 = vst [vmem:[%s2208_s20 + $0x8] sm:$0xff] %v1689_v3  }
 0x33c PF: > { %p19_p4 = scmp.ge.s32.totalorder %s2115_s17, 4   ;;  %s2242_s24 = smov %s1990_s25 }
 0x33d   : > { %s2243_s25 = smov %s1994_s26  ;;  %s2244_s26 = smov %s2126_s23 }
 0x33e   : > { %s2245_s27 = smov %s2115_s17  ;;  %21 = sbr.rel (!%p19_p4) target bundleno = 5 (0x5), region = 104 }
 0x343   :  { %1251 = vsyncpa [#allocation3], 1 }
 0x344   :  { %1253 = vsyncpa [#allocation3 + $0x1], 1 }
 0x345   :  { %1254 = vsyncpa [#allocation5], 1 }
 0x346   :  { %1255 = vsyncpa [#allocation8], 1 }

</bundles_post_ra>
